<compile_context>
chip_gen: v7x
topology: tpu7x:2x2x1
jax: 0.10.0
libtpu: 0.0.40
codegen_flags: <defaults>
</compile_context>

<pallas_src>
import jax
import jax.numpy as jnp
from jax.experimental import pallas as pl
from jax.experimental.pallas import tpu as pltpu

INPUT_SIZE = 10
HIDDEN_SIZE = 20
HP = 128  # per-gate lane padding (vreg lane width)


# --------------------------------------------------------------------------
# Kernels
# --------------------------------------------------------------------------
def input_proj_kernel(x_ref, wx_ref, b_ref, zx_ref):
    """Zx block = X block @ Wx_fused + b_fused (bias folded here).

    x_ref:  [BM, in]        rows = flattened (t, b)
    wx_ref: [in, 4*HP]      fused input->gate weights, gates i|f|g|o
    b_ref:  [1, 4*HP]       fused biases (Linear biases + extra b_* params)
    zx_ref: [BM, 4*HP]
    """
    zx_ref[...] = (jnp.dot(x_ref[...], wx_ref[...],
                           preferred_element_type=jnp.float32)
                   + b_ref[...]).astype(zx_ref.dtype)


def lstm_seq_kernel(zx_ref, wh_ref, h0_ref, c0_ref,
                    h_seq_ref, c_seq_ref, h_scr, c_scr):
    """One recurrence step; grid axis 0 = time (sequential, "arbitrary").

    zx_ref:    [1, B, 4*HP]  precomputed x-projection + bias for step t
    wh_ref:    [HP, 4*HP]    fused hidden->gate weights (rows >= H are zero),
                             constant index_map -> VMEM-resident across t
    h0_ref:    [B, HP]       initial h, HP-padded (constant index_map)
    c0_ref:    [B, HP]       initial c, HP-padded (constant index_map)
    h_seq_ref: [1, B, HP]    per-step h output block
    c_seq_ref: [1, B, HP]    per-step c output block
    h_scr/c_scr: [B, HP]     f32 VMEM scratch carried across grid steps
    """
    @pl.when(pl.program_id(0) == 0)
    def _init():
        h_scr[...] = h0_ref[...]
        c_scr[...] = c0_ref[...]

    # Single MXU matmul for all four gates of this step.
    z = zx_ref[0] + jnp.dot(h_scr[...], wh_ref[...],
                            preferred_element_type=jnp.float32)

    # Lane-aligned static slices (each gate block starts at a multiple of 128).
    i_t = jax.nn.sigmoid(z[:, 0 * HP:1 * HP])
    f_t = jax.nn.sigmoid(z[:, 1 * HP:2 * HP])
    g_t = jnp.tanh(z[:, 2 * HP:3 * HP])
    o_t = jax.nn.sigmoid(z[:, 3 * HP:4 * HP])

    c_t = f_t * c_scr[...] + i_t * g_t
    h_t = o_t * jnp.tanh(c_t)

    # Carry state in VMEM scratch (no HBM round-trip between steps).
    h_scr[...] = h_t
    c_scr[...] = c_t

    # Lane-dense per-step writeback.
    h_seq_ref[0] = h_t.astype(h_seq_ref.dtype)
    c_seq_ref[0] = c_t.astype(c_seq_ref.dtype)


# --------------------------------------------------------------------------
# Parameters
# --------------------------------------------------------------------------
def make_params(key, input_size=INPUT_SIZE, hidden_size=HIDDEN_SIZE,
                dtype=jnp.float32):
    """Deterministic parameter init mirroring the PyTorch module's shapes."""
    ks = jax.random.split(key, 16)
    params = {}
    names_in = [("ix", input_size), ("ih", hidden_size),
                ("fx", input_size), ("fh", hidden_size),
                ("cx", input_size), ("ch", hidden_size),
                ("ox", input_size), ("oh", hidden_size)]
    for idx, (name, in_dim) in enumerate(names_in):
        bound = 1.0 / jnp.sqrt(in_dim)
        w = jax.random.uniform(ks[2 * idx], (hidden_size, in_dim),
                               minval=-bound, maxval=bound, dtype=dtype)
        b = jax.random.uniform(ks[2 * idx + 1], (hidden_size,),
                               minval=-bound, maxval=bound, dtype=dtype)
        params[f"W_{name}_w"] = w
        params[f"W_{name}_b"] = b
    for g in "ifco":
        params[f"b_{g}"] = jnp.zeros((hidden_size,), dtype=dtype)
    return params


def fuse_params(params, input_size=INPUT_SIZE, hidden_size=HIDDEN_SIZE,
                hp=HP, dtype=jnp.float32):
    """Build fused, pre-transposed weights ONCE (hoisted out of the step path).

    Returns (Wx_fused [in, 4*hp], Wh_fused [hp, 4*hp], b_fused [1, 4*hp]).
    Gate order i | f | g(c) | o; each gate padded to `hp` lanes with zeros;
    Wh_fused is also zero-ROW padded to `hp` so the recurrent matmul takes
    the full HP-padded h state.
    """
    wx = jnp.zeros((input_size, 4 * hp), dtype=dtype)
    wh = jnp.zeros((hp, 4 * hp), dtype=dtype)
    b = jnp.zeros((1, 4 * hp), dtype=dtype)
    gates = [("ix", "ih", "b_i"), ("fx", "fh", "b_f"),
             ("cx", "ch", "b_c"), ("ox", "oh", "b_o")]
    for g, (gx, gh, extra) in enumerate(gates):
        col = g * hp
        wx = wx.at[:, col:col + hidden_size].set(
            params[f"W_{gx}_w"].T.astype(dtype))
        wh = wh.at[:hidden_size, col:col + hidden_size].set(
            params[f"W_{gh}_w"].T.astype(dtype))
        bg = params[f"W_{gx}_b"] + params[f"W_{gh}_b"] + params[extra]
        b = b.at[0, col:col + hidden_size].set(bg.astype(dtype))
    return wx, wh, b


# --------------------------------------------------------------------------
# Wrappers
# --------------------------------------------------------------------------
def lstm_sequence_pallas(x_seq, h0, c0, fused):
    """Run T LSTM-cell steps. x_seq: [T, B, in], h0/c0: [B, H].

    Returns (h_seq [T, B, H], c_seq [T, B, H]) — per-step outputs matching
    the PyTorch module's forward applied at each timestep.
    """
    wx, wh, b = fused
    T, B, in_dim = x_seq.shape
    H = HIDDEN_SIZE
    dtype = x_seq.dtype

    # -- Phase 1: whole-sequence input projection as one MXU-shaped GEMM. --
    TB = T * B
    BM = TB if (TB <= 1024 or TB % 512 != 0) else 512
    x_flat = x_seq.reshape(TB, in_dim)
    zx_flat = pl.pallas_call(
        input_proj_kernel,
        out_shape=jax.ShapeDtypeStruct((TB, 4 * HP), jnp.float32),
        grid=(TB // BM,),
        in_specs=[pl.BlockSpec((BM, in_dim), lambda i: (i, 0)),
                  pl.BlockSpec((in_dim, 4 * HP), lambda i: (0, 0)),
                  pl.BlockSpec((1, 4 * HP), lambda i: (0, 0))],
        out_specs=pl.BlockSpec((BM, 4 * HP), lambda i: (i, 0)),
        compiler_params=pltpu.CompilerParams(
            dimension_semantics=("parallel",)),
    )(x_flat, wx, b)
    zx = zx_flat.reshape(T, B, 4 * HP)

    # -- Phase 2: recurrence — single pallas_call, grid over timesteps. --
    h0_pad = jnp.pad(h0.astype(jnp.float32), ((0, 0), (0, HP - H)))
    c0_pad = jnp.pad(c0.astype(jnp.float32), ((0, 0), (0, HP - H)))
    h_seq, c_seq = pl.pallas_call(
        lstm_seq_kernel,
        out_shape=(jax.ShapeDtypeStruct((T, B, HP), dtype),
                   jax.ShapeDtypeStruct((T, B, HP), dtype)),
        grid=(T,),
        in_specs=[pl.BlockSpec((1, B, 4 * HP), lambda t: (t, 0, 0)),
                  pl.BlockSpec((HP, 4 * HP), lambda t: (0, 0)),   # resident
                  pl.BlockSpec((B, HP), lambda t: (0, 0)),        # resident
                  pl.BlockSpec((B, HP), lambda t: (0, 0))],       # resident
        out_specs=(pl.BlockSpec((1, B, HP), lambda t: (t, 0, 0)),
                   pl.BlockSpec((1, B, HP), lambda t: (t, 0, 0))),
        scratch_shapes=[pltpu.VMEM((B, HP), jnp.float32),
                        pltpu.VMEM((B, HP), jnp.float32)],
        compiler_params=pltpu.CompilerParams(
            dimension_semantics=("arbitrary",)),
    )(zx, wh, h0_pad, c0_pad)

    # Single narrowing slice for the whole sequence (not per step).
    return h_seq[:, :, :H], c_seq[:, :, :H]


def lstm_cell_pallas(x, hidden, fused):
    """Exact analogue of the PyTorch module's forward: one step."""
    h_prev, c_prev = hidden
    h_seq, c_seq = lstm_sequence_pallas(x[None], h_prev, c_prev, fused)
    return h_seq[0], c_seq[0]


# --------------------------------------------------------------------------
# Pure-JAX reference (matches the PyTorch forward exactly)
# --------------------------------------------------------------------------
def lstm_cell_ref(x, h_prev, c_prev, params):
    def lin(name, v):
        return v @ params[f"W_{name}_w"].T + params[f"W_{name}_b"]

    i_t = jax.nn.sigmoid(lin("ix", x) + lin("ih", h_prev) + params["b_i"])
    f_t = jax.nn.sigmoid(lin("fx", x) + lin("fh", h_prev) + params["b_f"])
    g_t = jnp.tanh(lin("cx", x) + lin("ch", h_prev) + params["b_c"])
    c_t = f_t * c_prev + i_t * g_t
    o_t = jax.nn.sigmoid(lin("ox", x) + lin("oh", h_prev) + params["b_o"])
    h_t = o_t * jnp.tanh(c_t)
    return h_t, c_t


# --------------------------------------------------------------------------
if __name__ == "__main__":
    key = jax.random.PRNGKey(0)
    k_param, k_x, k_h, k_c = jax.random.split(key, 4)

    T, B = 8, 8
    params = make_params(k_param)
    fused = fuse_params(params)   # hoisted: built once, reused every step

    x_seq = jax.random.normal(k_x, (T, B, INPUT_SIZE), dtype=jnp.float32)
    h0 = jax.random.normal(k_h, (B, HIDDEN_SIZE), dtype=jnp.float32)
    c0 = jax.random.normal(k_c, (B, HIDDEN_SIZE), dtype=jnp.float32)

    run_seq = jax.jit(lstm_sequence_pallas)
    h_seq, c_seq = jax.block_until_ready(run_seq(x_seq, h0, c0, fused))

    # Reference: Python loop over the per-step reference cell.
    h_r, c_r = h0, c0
    h_refs, c_refs = [], []
    for t in range(T):
        h_r, c_r = lstm_cell_ref(x_seq[t], h_r, c_r, params)
        h_refs.append(h_r)
        c_refs.append(c_r)
    h_ref_seq = jnp.stack(h_refs)
    c_ref_seq = jnp.stack(c_refs)

    assert h_seq.shape == (T, B, HIDDEN_SIZE)
    assert c_seq.shape == (T, B, HIDDEN_SIZE)
    assert jnp.allclose(h_seq, h_ref_seq, atol=2e-5, rtol=2e-5)
    assert jnp.allclose(c_seq, c_ref_seq, atol=2e-5, rtol=2e-5)

    # Single-step check: exactly the PyTorch module's forward signature.
    h1, c1 = jax.block_until_ready(lstm_cell_pallas(x_seq[0], (h0, c0), fused))
    assert jnp.allclose(h1, h_refs[0], atol=2e-5, rtol=2e-5)
    assert jnp.allclose(c1, c_refs[0], atol=2e-5, rtol=2e-5)

    print("KERNEL_OK")
</pallas_src>

<mosaic_0001>
module attributes {stable_mosaic.version = 11 : i64} {
  func.func @lstm_seq_kernel(%arg0: i32, %arg1: memref<1x8x512xf32, #tpu.memory_space<vmem>>, %arg2: memref<128x512xf32, #tpu.memory_space<vmem>>, %arg3: memref<8x128xf32, #tpu.memory_space<vmem>>, %arg4: memref<8x128xf32, #tpu.memory_space<vmem>>, %arg5: memref<1x8x128xf32, #tpu.memory_space<vmem>>, %arg6: memref<1x8x128xf32, #tpu.memory_space<vmem>>, %arg7: memref<8x128xf32, #tpu.memory_space<vmem>>, %arg8: memref<8x128xf32, #tpu.memory_space<vmem>>) attributes {dimension_semantics = [#tpu.dimension_semantics<arbitrary>], iteration_bounds = array<i64: 8>, scalar_prefetch = 0 : i64, scratch_operands = 2 : i64, tpu.core_type = #tpu.core_type<tc>, window_params = [{transform_indices = @transform_0, window_bounds = array<i64: 1, 8, 512>}, {pipeline_mode = #tpu.pipeline_mode<synchronous>, transform_indices = @transform_1, window_bounds = array<i64: 128, 512>}, {pipeline_mode = #tpu.pipeline_mode<synchronous>, transform_indices = @transform_2, window_bounds = array<i64: 8, 128>}, {pipeline_mode = #tpu.pipeline_mode<synchronous>, transform_indices = @transform_3, window_bounds = array<i64: 8, 128>}, {transform_indices = @transform_4, window_bounds = array<i64: 1, 8, 128>}, {transform_indices = @transform_5, window_bounds = array<i64: 1, 8, 128>}]} {
    %c0_i32 = arith.constant 0 : i32
    %0 = arith.cmpi eq, %arg0, %c0_i32 : i32
    %1 = arith.extui %0 : i1 to i32
    %c0_i32_0 = arith.constant 0 : i32
    %2 = arith.cmpi ne, %1, %c0_i32_0 : i32
    scf.if %2 {
      %c0_22 = arith.constant 0 : index
      %c0_23 = arith.constant 0 : index
      %43 = vector.load %arg3[%c0_22, %c0_23] : memref<8x128xf32, #tpu.memory_space<vmem>>, vector<8x128xf32>
      %c0_24 = arith.constant 0 : index
      %c0_25 = arith.constant 0 : index
      %44 = vector.load %arg7[%c0_24, %c0_25] : memref<8x128xf32, #tpu.memory_space<vmem>>, vector<8x128xf32>
      tpu.vector_store %arg7[%c0_24, %c0_25], %43 {strides = array<i32>} : memref<8x128xf32, #tpu.memory_space<vmem>>, vector<8x128xf32>,
      %c0_26 = arith.constant 0 : index
      %c0_27 = arith.constant 0 : index
      %45 = vector.load %arg4[%c0_26, %c0_27] : memref<8x128xf32, #tpu.memory_space<vmem>>, vector<8x128xf32>
      %c0_28 = arith.constant 0 : index
      %c0_29 = arith.constant 0 : index
      %46 = vector.load %arg8[%c0_28, %c0_29] : memref<8x128xf32, #tpu.memory_space<vmem>>, vector<8x128xf32>
      tpu.vector_store %arg8[%c0_28, %c0_29], %45 {strides = array<i32>} : memref<8x128xf32, #tpu.memory_space<vmem>>, vector<8x128xf32>,
    } else {
    }
    %c0 = arith.constant 0 : index
    %c0_1 = arith.constant 0 : index
    %c0_2 = arith.constant 0 : index
    %3 = vector.load %arg1[%c0, %c0_1, %c0_2] : memref<1x8x512xf32, #tpu.memory_space<vmem>>, vector<1x8x512xf32>
    %4 = vector.shape_cast %3 : vector<1x8x512xf32> to vector<8x512xf32>
    %c0_3 = arith.constant 0 : index
    %c0_4 = arith.constant 0 : index
    %5 = vector.load %arg7[%c0_3, %c0_4] : memref<8x128xf32, #tpu.memory_space<vmem>>, vector<8x128xf32>
    %c0_5 = arith.constant 0 : index
    %c0_6 = arith.constant 0 : index
    %6 = vector.load %arg2[%c0_5, %c0_6] : memref<128x512xf32, #tpu.memory_space<vmem>>, vector<128x512xf32>
    %cst = arith.constant dense<0.000000e+00> : vector<8x512xf32>
    %7 = tpu.matmul %5, %6, %cst {dimension_numbers = #tpu.dot_dimension_numbers<[1], [0], [0], [1], [0, 0, 1, 1], [], []>} : vector<8x128xf32>, vector<128x512xf32>, vector<8x512xf32> -> vector<8x512xf32>
    %8 = arith.addf %4, %7 : vector<8x512xf32>
    %9 = vector.extract_strided_slice %8 {offsets = [0, 0], sizes = [8, 128], strides = [1, 1]} : vector<8x512xf32> to vector<8x128xf32>
    %10 = arith.negf %9 : vector<8x128xf32>
    %11 = math.exp %10 : vector<8x128xf32>
    %cst_7 = arith.constant 1.000000e+00 : f32
    %12 = vector.broadcast %cst_7 : f32 to vector<8x128xf32>
    %13 = arith.addf %12, %11 : vector<8x128xf32>
    %14 = arith.divf %12, %13 : vector<8x128xf32>
    %15 = vector.extract_strided_slice %8 {offsets = [0, 128], sizes = [8, 128], strides = [1, 1]} : vector<8x512xf32> to vector<8x128xf32>
    %16 = arith.negf %15 : vector<8x128xf32>
    %17 = math.exp %16 : vector<8x128xf32>
    %cst_8 = arith.constant 1.000000e+00 : f32
    %18 = vector.broadcast %cst_8 : f32 to vector<8x128xf32>
    %19 = arith.addf %18, %17 : vector<8x128xf32>
    %20 = arith.divf %18, %19 : vector<8x128xf32>
    %21 = vector.extract_strided_slice %8 {offsets = [0, 256], sizes = [8, 128], strides = [1, 1]} : vector<8x512xf32> to vector<8x128xf32>
    %22 = math.tanh %21 : vector<8x128xf32>
    %23 = vector.extract_strided_slice %8 {offsets = [0, 384], sizes = [8, 128], strides = [1, 1]} : vector<8x512xf32> to vector<8x128xf32>
    %24 = arith.negf %23 : vector<8x128xf32>
    %25 = math.exp %24 : vector<8x128xf32>
    %cst_9 = arith.constant 1.000000e+00 : f32
    %26 = vector.broadcast %cst_9 : f32 to vector<8x128xf32>
    %27 = arith.addf %26, %25 : vector<8x128xf32>
    %28 = arith.divf %26, %27 : vector<8x128xf32>
    %c0_10 = arith.constant 0 : index
    %c0_11 = arith.constant 0 : index
    %29 = vector.load %arg8[%c0_10, %c0_11] : memref<8x128xf32, #tpu.memory_space<vmem>>, vector<8x128xf32>
    %30 = arith.mulf %20, %29 : vector<8x128xf32>
    %31 = arith.mulf %14, %22 : vector<8x128xf32>
    %32 = arith.addf %30, %31 : vector<8x128xf32>
    %33 = math.tanh %32 : vector<8x128xf32>
    %34 = arith.mulf %28, %33 : vector<8x128xf32>
    %c0_12 = arith.constant 0 : index
    %c0_13 = arith.constant 0 : index
    %35 = vector.load %arg7[%c0_12, %c0_13] : memref<8x128xf32, #tpu.memory_space<vmem>>, vector<8x128xf32>
    tpu.vector_store %arg7[%c0_12, %c0_13], %34 {strides = array<i32>} : memref<8x128xf32, #tpu.memory_space<vmem>>, vector<8x128xf32>,
    %c0_14 = arith.constant 0 : index
    %c0_15 = arith.constant 0 : index
    %36 = vector.load %arg8[%c0_14, %c0_15] : memref<8x128xf32, #tpu.memory_space<vmem>>, vector<8x128xf32>
    tpu.vector_store %arg8[%c0_14, %c0_15], %32 {strides = array<i32>} : memref<8x128xf32, #tpu.memory_space<vmem>>, vector<8x128xf32>,
    %c0_16 = arith.constant 0 : index
    %c0_17 = arith.constant 0 : index
    %c0_18 = arith.constant 0 : index
    %37 = vector.load %arg5[%c0_16, %c0_17, %c0_18] : memref<1x8x128xf32, #tpu.memory_space<vmem>>, vector<1x8x128xf32>
    %38 = vector.shape_cast %37 : vector<1x8x128xf32> to vector<8x128xf32>
    %39 = vector.shape_cast %34 : vector<8x128xf32> to vector<1x8x128xf32>
    tpu.vector_store %arg5[%c0_16, %c0_17, %c0_18], %39 {strides = array<i32>} : memref<1x8x128xf32, #tpu.memory_space<vmem>>, vector<1x8x128xf32>,
    %c0_19 = arith.constant 0 : index
    %c0_20 = arith.constant 0 : index
    %c0_21 = arith.constant 0 : index
    %40 = vector.load %arg6[%c0_19, %c0_20, %c0_21] : memref<1x8x128xf32, #tpu.memory_space<vmem>>, vector<1x8x128xf32>
    %41 = vector.shape_cast %40 : vector<1x8x128xf32> to vector<8x128xf32>
    %42 = vector.shape_cast %32 : vector<8x128xf32> to vector<1x8x128xf32>
    tpu.vector_store %arg6[%c0_19, %c0_20, %c0_21], %42 {strides = array<i32>} : memref<1x8x128xf32, #tpu.memory_space<vmem>>, vector<1x8x128xf32>,
    return
  }
  func.func @transform_0(%arg0: i32) -> (i32, i32, i32) {
    %c0_i32 = arith.constant 0 : i32
    %c0_i32_0 = arith.constant 0 : i32
    %c0_i32_1 = arith.constant 0 : i32
    return %arg0, %c0_i32, %c0_i32_0 : i32, i32, i32
  }
  func.func @transform_1(%arg0: i32) -> (i32, i32) {
    %c0_i32 = arith.constant 0 : i32
    %c0_i32_0 = arith.constant 0 : i32
    %c0_i32_1 = arith.constant 0 : i32
    return %c0_i32, %c0_i32_0 : i32, i32
  }
  func.func @transform_2(%arg0: i32) -> (i32, i32) {
    %c0_i32 = arith.constant 0 : i32
    %c0_i32_0 = arith.constant 0 : i32
    %c0_i32_1 = arith.constant 0 : i32
    return %c0_i32, %c0_i32_0 : i32, i32
  }
  func.func @transform_3(%arg0: i32) -> (i32, i32) {
    %c0_i32 = arith.constant 0 : i32
    %c0_i32_0 = arith.constant 0 : i32
    %c0_i32_1 = arith.constant 0 : i32
    return %c0_i32, %c0_i32_0 : i32, i32
  }
  func.func @transform_4(%arg0: i32) -> (i32, i32, i32) {
    %c0_i32 = arith.constant 0 : i32
    %c0_i32_0 = arith.constant 0 : i32
    %c0_i32_1 = arith.constant 0 : i32
    return %arg0, %c0_i32, %c0_i32_0 : i32, i32, i32
  }
  func.func @transform_5(%arg0: i32) -> (i32, i32, i32) {
    %c0_i32 = arith.constant 0 : i32
    %c0_i32_0 = arith.constant 0 : i32
    %c0_i32_1 = arith.constant 0 : i32
    return %arg0, %c0_i32, %c0_i32_0 : i32, i32, i32
  }
}

module attributes {stable_mosaic.version = 11 : i64} {
  func.func @input_proj_kernel(%arg0: i32, %arg1: memref<64x10xf32, #tpu.memory_space<vmem>>, %arg2: memref<10x512xf32, #tpu.memory_space<vmem>>, %arg3: memref<1x512xf32, #tpu.memory_space<vmem>>, %arg4: memref<64x512xf32, #tpu.memory_space<vmem>>) attributes {dimension_semantics = [#tpu.dimension_semantics<parallel>], iteration_bounds = array<i64: 1>, scalar_prefetch = 0 : i64, scratch_operands = 0 : i64, tpu.core_type = #tpu.core_type<tc>, window_params = [{transform_indices = @transform_0, window_bounds = array<i64: 64, 10>}, {pipeline_mode = #tpu.pipeline_mode<synchronous>, transform_indices = @transform_1, window_bounds = array<i64: 10, 512>}, {pipeline_mode = #tpu.pipeline_mode<synchronous>, transform_indices = @transform_2, window_bounds = array<i64: 1, 512>}, {transform_indices = @transform_3, window_bounds = array<i64: 64, 512>}]} {
    %c0 = arith.constant 0 : index
    %c0_0 = arith.constant 0 : index
    %0 = vector.load %arg1[%c0, %c0_0] : memref<64x10xf32, #tpu.memory_space<vmem>>, vector<64x10xf32>
    %c0_1 = arith.constant 0 : index
    %c0_2 = arith.constant 0 : index
    %1 = vector.load %arg2[%c0_1, %c0_2] : memref<10x512xf32, #tpu.memory_space<vmem>>, vector<10x512xf32>
    %cst = arith.constant dense<0.000000e+00> : vector<64x512xf32>
    %2 = tpu.matmul %0, %1, %cst {dimension_numbers = #tpu.dot_dimension_numbers<[1], [0], [0], [1], [0, 0, 1, 1], [], []>} : vector<64x10xf32>, vector<10x512xf32>, vector<64x512xf32> -> vector<64x512xf32>
    %c0_3 = arith.constant 0 : index
    %c0_4 = arith.constant 0 : index
    %3 = vector.load %arg3[%c0_3, %c0_4] : memref<1x512xf32, #tpu.memory_space<vmem>>, vector<1x512xf32>
    %4 = vector.broadcast %3 : vector<1x512xf32> to vector<64x512xf32>
    %5 = arith.addf %2, %4 : vector<64x512xf32>
    %c0_5 = arith.constant 0 : index
    %c0_6 = arith.constant 0 : index
    %6 = vector.load %arg4[%c0_5, %c0_6] : memref<64x512xf32, #tpu.memory_space<vmem>>, vector<64x512xf32>
    tpu.vector_store %arg4[%c0_5, %c0_6], %5 {strides = array<i32>} : memref<64x512xf32, #tpu.memory_space<vmem>>, vector<64x512xf32>,
    return
  }
  func.func @transform_0(%arg0: i32) -> (i32, i32) {
    %c0_i32 = arith.constant 0 : i32
    %c0_i32_0 = arith.constant 0 : i32
    return %arg0, %c0_i32 : i32, i32
  }
  func.func @transform_1(%arg0: i32) -> (i32, i32) {
    %c0_i32 = arith.constant 0 : i32
    %c0_i32_0 = arith.constant 0 : i32
    %c0_i32_1 = arith.constant 0 : i32
    return %c0_i32, %c0_i32_0 : i32, i32
  }
  func.func @transform_2(%arg0: i32) -> (i32, i32) {
    %c0_i32 = arith.constant 0 : i32
    %c0_i32_0 = arith.constant 0 : i32
    %c0_i32_1 = arith.constant 0 : i32
    return %c0_i32, %c0_i32_0 : i32, i32
  }
  func.func @transform_3(%arg0: i32) -> (i32, i32) {
    %c0_i32 = arith.constant 0 : i32
    %c0_i32_0 = arith.constant 0 : i32
    return %arg0, %c0_i32 : i32, i32
  }
}

</mosaic_0001>

<bundles_post_ra>
// kernel: lstm_sequence_pallas.2
= control target key start
LH: loop header
LB: loop body
LE: loop exit
PB: predicated region body
PF: predicated region fallthrough
CT: control target
= control target key end

     0   :  { %8 = vsyncpa [#allocation3], 0  ;;  %s689_s0 = inlined_call_operand.hbm [shape: f32[64,10], index: 0, kind: input, shape index: {}]   ;;  %s690_s1 = inlined_call_operand.hbm [shape: f32[10,512], index: 1, kind: input, shape index: {}]   ;;  %s691_s2 = inlined_call_operand.vmem [shape: f32[1,512], index: 2, kind: input, shape index: {}]   ;;  %s692_s3 = inlined_call_operand.vmem [shape: f32[64,512], index: 3, kind: output, shape index: {}]  }
   0x1   :  { %9 = vsyncpa [#allocation5], 0  ;;  %s470_s12 = smov [#allocation2]   ;;  %s422_s16 = scalar_lea.hbm %s689_s0, 1024 }
   0x2   :  { %s15_s13 = sshll.u32 %s470_s12, 4  ;;  %p423_p0 = scmp.ne.s32.totalorder %s689_s0, %s422_s16  ;;  %s16_s13 = int_to_ptr.vmem [resolvable:$true] %s15_s13 }
   0x3   :  { %p426_p1 = scmp.lt.u32.totalorder %s422_s16, %s689_s0 }
   0x5   :  { %p428_p2 = pnand %p426_p1, %p423_p0 }
   0x7   :  { %431 = shalt.err (!%p428_p2)
}
   0x8   :  { %s432_s21 = scalar_lea.vmem %s16_s13, 1024  ;;  %p437_p4 = scmp.lt.s32.totalorder %s16_s13, %s16_s13 }
   0x9   :  { %p433_p3 = scmp.ne.s32.totalorder %s16_s13, %s432_s21  ;;  %p438_p5 = scmp.lt.s32.totalorder %s432_s21, %s432_s21 }
   0xb   :  { %p439_p6 = por %p438_p5, %p437_p4 }
   0xd   :  { %p440_p7 = pnand %p439_p6, %p433_p3 }
   0xf   :  { %443 = shalt.err (!%p440_p7)
}
  0x10   :  { %s471_s22 = smov 128   ;;  %s472_s23 = smov 8  }
  0x11   :  { %21 = dma.hbm_to_vmem [thread:$0]  %s689_s0, 1024, %s16_s13, [#allocation3], %s471_s22, %s471_s22, %s472_s23  }
  0x12   :  { %s473_s26 = smov [#allocation4]   ;;  %s444_s30 = scalar_lea.hbm %s690_s1, 1024 }
  0x13   :  { %s27_s27 = sshll.u32 %s473_s26, 4  ;;  %p445_p8 = scmp.ne.s32.totalorder %s690_s1, %s444_s30  ;;  %s28_s27 = int_to_ptr.vmem [resolvable:$true] %s27_s27 }
  0x14   :  { %p448_p9 = scmp.lt.u32.totalorder %s444_s30, %s690_s1 }
  0x16   :  { %p450_p10 = pnand %p448_p9, %p445_p8 }
  0x18   :  { %453 = shalt.err (!%p450_p10)
}
  0x19   :  { %s454_s8 = scalar_lea.vmem %s28_s27, 1024  ;;  %p459_p12 = scmp.lt.s32.totalorder %s28_s27, %s28_s27 }
  0x1a   :  { %p455_p11 = scmp.ne.s32.totalorder %s28_s27, %s454_s8  ;;  %p460_p13 = scmp.lt.s32.totalorder %s454_s8, %s454_s8 }
  0x1c   :  { %p461_p0 = por %p460_p13, %p459_p12 }
  0x1e   :  { %p462_p1 = pnand %p461_p0, %p455_p11 }
  0x20   :  { %465 = shalt.err (!%p462_p1)
}
  0x21   :  { %s474_s0 = smov 512   ;;  %s475_s9 = smov 32  }
  0x22   :  { %33 = dma.hbm_to_vmem [thread:$0]  %s690_s1, 1024, %s28_s27, [#allocation5], %s474_s0, %s474_s0, %s475_s9  }
  0x23   :  { %466 = dma.done.wait [#allocation3], 1024  }
  0x24   :  { %467 = vsyncadd [#allocation3], 4294966272 }
  0x25   :  { %468 = dma.done.wait [#allocation5], 1024  }
  0x26   :  { %469 = vsyncadd [#allocation5], 4294966272  ;;  %v476_v0 = vmov 0.0   ;;  %vm105_vm0 = vcmask 1041408   ;;  %vm477_vm1 = vmmov 1   ;;  %v51_v2 = vld [vmem:[#allocation4 + $0x8] sm:$0xff]  ;;  %v60_v22 = vlaneseq }
  0x27   :  { %182 = vmatprep.mubr.f32.mxu0 %v476_v0  ;;  %295 = vmatprep.mubr.f32.mxu1 %v476_v0  ;;  %vm522_vm2 = vmpackc.low %vm105_vm0, %vm477_vm1  ;;  %v55_v3 = vld [vmem:[#allocation4 + $0x28] sm:$0x3]  ;;  %v53_v4 = vld [vmem:[#allocation4 + $0x18] sm:$0xff]  ;;  %vm80_vm3 = vcmask 80896  }
  0x28   :  { %v402_v5 = vpack.c.bf16 %v55_v3, %v51_v2  ;;  %v57_v6 = vld [vmem:[#allocation4 + $0x38] sm:$0x3]  ;;  %v50_v7 = vld [vmem:[#allocation4] sm:$0xff]  ;;  %v52_v11 = vld [vmem:[#allocation4 + $0x10] sm:$0xff]  ;;  %v61_v23 = vshrl.u32 %v60_v22, 7 }
  0x29   :  { %v54_v8 = vld [vmem:[#allocation4 + $0x20] sm:$0x3]  ;;  %v408_v9 = vpack.c.bf16 %v57_v6, %v53_v4  ;;  %v56_v12 = vld [vmem:[#allocation4 + $0x30] sm:$0x3]  ;;  %v43_v15 = vld [vmem:[#allocation2 + $0x8] sm:$0xff] }
  0x2a   :  { %v405_v10 = vpack.c.bf16 %v54_v8, %v50_v7  ;;  %404 = vmatprep.subr.msk.bf16.mxu0 %vm522_vm2, %v402_v5  ;;  %v411_v13 = vpack.c.bf16 %v56_v12, %v52_v11  ;;  %v42_v14 = vld [vmem:[#allocation2] sm:$0xff]  ;;  %v44_v16 = vld [vmem:[#allocation2 + $0x10] sm:$0xff]  ;;  %v45_v17 = vld [vmem:[#allocation2 + $0x18] sm:$0xff]  ;;  %v62_v24 = vsub.s32 0, %v61_v23  ;;  %v70_v26 = vsub.s32 2, %v61_v23 }
  0x2b   :  { %410 = vmatprep.subr.msk.bf16.mxu1 %vm522_vm2, %v408_v9  ;;  %v46_v18 = vld [vmem:[#allocation2 + $0x20] sm:$0xff]  ;;  %v47_v19 = vld [vmem:[#allocation2 + $0x28] sm:$0xff]  ;;  %v48_v20 = vld [vmem:[#allocation2 + $0x30] sm:$0xff]  ;;  %v66_v27 = vsub.s32 1, %v61_v23  ;;  %v74_v28 = vsub.s32 3, %v61_v23 }
  0x2c   :  { %407 = vmatpush1.bf16.msk.msra.mxu0 %vm522_vm2, %v405_v10  ;;  %413 = vmatpush1.bf16.msk.msra.mxu1 %vm522_vm2, %v411_v13  ;;  %v49_v21 = vld [vmem:[#allocation2 + $0x38] sm:$0xff]  ;;  %v58_v25 = vld [vmem:[%s691_s2] sm:$0xf] }
  0x2d   :  { %v553_v29 = vrot.slane %v58_v25, %v62_v24  ;;  %v555_v30 = vrot.slane %v58_v25, %v70_v26  ;;  %v557_v31 = vrot.slane %v58_v25, %v66_v27  ;;  %v559_v32 = vrot.slane %v58_v25, %v74_v28 }
  0x2f   :  { %384 = vmatmul.mubr.msk.f32.vlgmr.msra.gmra.mrb[0].mxu0 %vm80_vm3, %v42_v14  ;;  %394 = vmatmul.mubr.msk.f32.vlgmr.msra.gmra.mrb[0].mxu1 %vm80_vm3, %v42_v14 }
  0x30   :  { %188 = vmatprep.mubr.f32.mxu0 %v476_v0  ;;  %301 = vmatprep.mubr.f32.mxu1 %v476_v0 }
  0x33   :  { %385 = vmatmul.mubr.msk.f32.gmra.mrb[2].mxu0 %vm80_vm3, %v43_v15  ;;  %395 = vmatmul.mubr.msk.f32.gmra.mrb[2].mxu1 %vm80_vm3, %v43_v15 }
  0x34   :  { %194 = vmatprep.mubr.f32.mxu0 %v476_v0  ;;  %307 = vmatprep.mubr.f32.mxu1 %v476_v0 }
  0x37   :  { %386 = vmatmul.mubr.msk.f32.gmra.mrb[4].mxu0 %vm80_vm3, %v44_v16  ;;  %396 = vmatmul.mubr.msk.f32.gmra.mrb[4].mxu1 %vm80_vm3, %v44_v16 }
  0x38   :  { %200 = vmatprep.mubr.f32.mxu0 %v476_v0  ;;  %313 = vmatprep.mubr.f32.mxu1 %v476_v0 }
  0x3b   :  { %387 = vmatmul.mubr.msk.f32.gmra.mrb[6].mxu0 %vm80_vm3, %v45_v17  ;;  %397 = vmatmul.mubr.msk.f32.gmra.mrb[6].mxu1 %vm80_vm3, %v45_v17 }
  0x3c   :  { %206 = vmatprep.mubr.f32.mxu0 %v476_v0  ;;  %319 = vmatprep.mubr.f32.mxu1 %v476_v0 }
  0x3f   :  { %388 = vmatmul.mubr.msk.f32.gmra.mrb[8].mxu0 %vm80_vm3, %v46_v18  ;;  %398 = vmatmul.mubr.msk.f32.gmra.mrb[8].mxu1 %vm80_vm3, %v46_v18 }
  0x40   :  { %212 = vmatprep.mubr.f32.mxu0 %v476_v0  ;;  %325 = vmatprep.mubr.f32.mxu1 %v476_v0 }
  0x43   :  { %389 = vmatmul.mubr.msk.f32.gmra.mrb[10].mxu0 %vm80_vm3, %v47_v19  ;;  %399 = vmatmul.mubr.msk.f32.gmra.mrb[10].mxu1 %vm80_vm3, %v47_v19 }
  0x44   :  { %218 = vmatprep.mubr.f32.mxu0 %v476_v0  ;;  %331 = vmatprep.mubr.f32.mxu1 %v476_v0 }
  0x47   :  { %390 = vmatmul.mubr.msk.f32.gmra.mrb[12].mxu0 %vm80_vm3, %v48_v20  ;;  %400 = vmatmul.mubr.msk.f32.gmra.mrb[12].mxu1 %vm80_vm3, %v48_v20 }
  0x48   :  { %224 = vmatprep.mubr.f32.mxu0 %v476_v0  ;;  %337 = vmatprep.mubr.f32.mxu1 %v476_v0 }
  0x4b   :  { %391 = vmatmul.mubr.msk.f32.gmra.mrb[14].mxu0 %vm80_vm3, %v49_v21  ;;  %401 = vmatmul.mubr.msk.f32.gmra.mrb[14].mxu1 %vm80_vm3, %v49_v21 }
 0x102   :  { %v184_v33 = vpop.f32.mrb[0].mxu0  ;;  %v297_v35 = vpop.f32.mrb[0].mxu1 }
 0x103   :  { %v185_v34 = vadd.f32 %v184_v33, %v553_v29  ;;  %v186_v36 = vpop.f32.mrb[1].mxu0  ;;  %v298_v37 = vadd.f32 %v297_v35, %v555_v30  ;;  %v299_v39 = vpop.f32.mrb[1].mxu1 }
 0x104   :  { %v187_v38 = vadd.f32 %v186_v36, %v557_v31  ;;  %v300_v40 = vadd.f32 %v299_v39, %v559_v32 }
 0x105   :  { %344 = vst [vmem:[%s692_s3] sm:$0xff] %v185_v34  ;;  %346 = vst [vmem:[%s692_s3 + $0x10] sm:$0xff] %v298_v37 }
 0x106   :  { %345 = vst [vmem:[%s692_s3 + $0x8] sm:$0xff] %v187_v38  ;;  %v190_v41 = vpop.f32.mrb[2].mxu0  ;;  %347 = vst [vmem:[%s692_s3 + $0x18] sm:$0xff] %v300_v40  ;;  %v303_v43 = vpop.f32.mrb[2].mxu1 }
 0x107   :  { %v191_v42 = vadd.f32 %v190_v41, %v553_v29  ;;  %v192_v44 = vpop.f32.mrb[3].mxu0  ;;  %v304_v45 = vadd.f32 %v303_v43, %v555_v30  ;;  %v305_v47 = vpop.f32.mrb[3].mxu1 }
 0x108   :  { %v193_v46 = vadd.f32 %v192_v44, %v557_v31  ;;  %v306_v48 = vadd.f32 %v305_v47, %v559_v32 }
 0x109   :  { %348 = vst [vmem:[%s692_s3 + $0x20] sm:$0xff] %v191_v42  ;;  %350 = vst [vmem:[%s692_s3 + $0x30] sm:$0xff] %v304_v45 }
 0x10a   :  { %349 = vst [vmem:[%s692_s3 + $0x28] sm:$0xff] %v193_v46  ;;  %v196_v49 = vpop.f32.mrb[4].mxu0  ;;  %351 = vst [vmem:[%s692_s3 + $0x38] sm:$0xff] %v306_v48  ;;  %v309_v51 = vpop.f32.mrb[4].mxu1 }
 0x10b   :  { %v197_v50 = vadd.f32 %v196_v49, %v553_v29  ;;  %v198_v52 = vpop.f32.mrb[5].mxu0  ;;  %v310_v53 = vadd.f32 %v309_v51, %v555_v30  ;;  %v311_v55 = vpop.f32.mrb[5].mxu1 }
 0x10c   :  { %v199_v54 = vadd.f32 %v198_v52, %v557_v31  ;;  %v312_v56 = vadd.f32 %v311_v55, %v559_v32 }
 0x10d   :  { %352 = vst [vmem:[%s692_s3 + $0x40] sm:$0xff] %v197_v50  ;;  %354 = vst [vmem:[%s692_s3 + $0x50] sm:$0xff] %v310_v53 }
 0x10e   :  { %353 = vst [vmem:[%s692_s3 + $0x48] sm:$0xff] %v199_v54  ;;  %v202_v57 = vpop.f32.mrb[6].mxu0  ;;  %355 = vst [vmem:[%s692_s3 + $0x58] sm:$0xff] %v312_v56  ;;  %v315_v59 = vpop.f32.mrb[6].mxu1 }
 0x10f   :  { %v203_v58 = vadd.f32 %v202_v57, %v553_v29  ;;  %v204_v60 = vpop.f32.mrb[7].mxu0  ;;  %v316_v61 = vadd.f32 %v315_v59, %v555_v30  ;;  %v317_v63 = vpop.f32.mrb[7].mxu1 }
 0x110   :  { %v205_v62 = vadd.f32 %v204_v60, %v557_v31  ;;  %v318_v0 = vadd.f32 %v317_v63, %v559_v32 }
 0x111   :  { %356 = vst [vmem:[%s692_s3 + $0x60] sm:$0xff] %v203_v58  ;;  %358 = vst [vmem:[%s692_s3 + $0x70] sm:$0xff] %v316_v61 }
 0x112   :  { %357 = vst [vmem:[%s692_s3 + $0x68] sm:$0xff] %v205_v62  ;;  %v208_v1 = vpop.f32.mrb[8].mxu0  ;;  %359 = vst [vmem:[%s692_s3 + $0x78] sm:$0xff] %v318_v0  ;;  %v321_v3 = vpop.f32.mrb[8].mxu1 }
 0x113   :  { %v209_v2 = vadd.f32 %v208_v1, %v553_v29  ;;  %v210_v4 = vpop.f32.mrb[9].mxu0  ;;  %v322_v5 = vadd.f32 %v321_v3, %v555_v30  ;;  %v323_v7 = vpop.f32.mrb[9].mxu1 }
 0x114   :  { %v211_v6 = vadd.f32 %v210_v4, %v557_v31  ;;  %v324_v8 = vadd.f32 %v323_v7, %v559_v32 }
 0x115   :  { %360 = vst [vmem:[%s692_s3 + $0x80] sm:$0xff] %v209_v2  ;;  %362 = vst [vmem:[%s692_s3 + $0x90] sm:$0xff] %v322_v5 }
 0x116   :  { %361 = vst [vmem:[%s692_s3 + $0x88] sm:$0xff] %v211_v6  ;;  %v214_v9 = vpop.f32.mrb[10].mxu0  ;;  %363 = vst [vmem:[%s692_s3 + $0x98] sm:$0xff] %v324_v8  ;;  %v327_v11 = vpop.f32.mrb[10].mxu1 }
 0x117   :  { %v215_v10 = vadd.f32 %v214_v9, %v553_v29  ;;  %v216_v12 = vpop.f32.mrb[11].mxu0  ;;  %v328_v13 = vadd.f32 %v327_v11, %v555_v30  ;;  %v329_v15 = vpop.f32.mrb[11].mxu1 }
 0x118   :  { %v217_v14 = vadd.f32 %v216_v12, %v557_v31  ;;  %v330_v16 = vadd.f32 %v329_v15, %v559_v32 }
 0x119   :  { %364 = vst [vmem:[%s692_s3 + $0xa0] sm:$0xff] %v215_v10  ;;  %366 = vst [vmem:[%s692_s3 + $0xb0] sm:$0xff] %v328_v13 }
 0x11a   :  { %365 = vst [vmem:[%s692_s3 + $0xa8] sm:$0xff] %v217_v14  ;;  %v220_v17 = vpop.f32.mrb[12].mxu0  ;;  %367 = vst [vmem:[%s692_s3 + $0xb8] sm:$0xff] %v330_v16  ;;  %v333_v19 = vpop.f32.mrb[12].mxu1 }
 0x11b   :  { %v221_v18 = vadd.f32 %v220_v17, %v553_v29  ;;  %v222_v20 = vpop.f32.mrb[13].mxu0  ;;  %v334_v21 = vadd.f32 %v333_v19, %v555_v30  ;;  %v335_v23 = vpop.f32.mrb[13].mxu1 }
 0x11c   :  { %v223_v22 = vadd.f32 %v222_v20, %v557_v31  ;;  %v336_v24 = vadd.f32 %v335_v23, %v559_v32 }
 0x11d   :  { %368 = vst [vmem:[%s692_s3 + $0xc0] sm:$0xff] %v221_v18  ;;  %370 = vst [vmem:[%s692_s3 + $0xd0] sm:$0xff] %v334_v21 }
 0x11e   :  { %369 = vst [vmem:[%s692_s3 + $0xc8] sm:$0xff] %v223_v22  ;;  %v226_v25 = vpop.f32.mrb[14].mxu0  ;;  %371 = vst [vmem:[%s692_s3 + $0xd8] sm:$0xff] %v336_v24  ;;  %v339_v27 = vpop.f32.mrb[14].mxu1 }
 0x11f   :  { %v227_v26 = vadd.f32 %v226_v25, %v553_v29  ;;  %v228_v28 = vpop.f32.mrb[15].mxu0  ;;  %v340_v33 = vadd.f32 %v339_v27, %v555_v30  ;;  %v341_v35 = vpop.f32.mrb[15].mxu1 }
 0x120   :  { %v229_v34 = vadd.f32 %v228_v28, %v557_v31  ;;  %v342_v36 = vadd.f32 %v341_v35, %v559_v32 }
 0x121   :  { %372 = vst [vmem:[%s692_s3 + $0xe0] sm:$0xff] %v227_v26  ;;  %374 = vst [vmem:[%s692_s3 + $0xf0] sm:$0xff] %v340_v33 }
 0x122   :  { %373 = vst [vmem:[%s692_s3 + $0xe8] sm:$0xff] %v229_v34  ;;  %375 = vst [vmem:[%s692_s3 + $0xf8] sm:$0xff] %v342_v36 }
 0x123   :  { %380 = vsyncpa [#allocation3], 1 }
 0x124   :  { %381 = vsyncpa [#allocation5], 1 }

// kernel: lstm_sequence_pallas.3
= control target key start
LH: loop header
LB: loop body
LE: loop exit
PB: predicated region body
PF: predicated region fallthrough
CT: control target
= control target key end

     0   :  { %11 = vsyncpa [#allocation5], 0  ;;  %s1154_s0 = inlined_call_operand.vmem [shape: f32[8,8,512], index: 0, kind: input, shape index: {}]   ;;  %s1155_s1 = inlined_call_operand.hbm [shape: f32[128,512], index: 1, kind: input, shape index: {}]   ;;  %s1156_s2 = inlined_call_operand.vmem [shape: f32[8,128], index: 2, kind: input, shape index: {}]   ;;  %s1157_s3 = inlined_call_operand.vmem [shape: f32[8,128], index: 3, kind: input, shape index: {}]   ;;  %s1158_s4 = inlined_call_operand.hbm [shape: f32[8,8,128], index: 4, kind: output, shape index: {0}]   ;;  %s1159_s5 = inlined_call_operand.hbm [shape: f32[8,8,128], index: 5, kind: output, shape index: {1}]  }
   0x1   :  { %12 = vsyncpa [#allocation6], 0 }
   0x2   :  { %14 = vsyncpa [#allocation6 + $0x1], 0 }
   0x3   :  { %15 = vsyncpa [#allocation9], 0 }
   0x4   :  { %17 = vsyncpa [#allocation9 + $0x1], 0  ;;  %s959_s18 = smov 0   ;;  %s961_s19 = smov 0  }
   0x5   :  { %s963_s20 = smov 0   ;;  %s965_s21 = smov 0  }
   0x6 LB: > { %s980_s22 = sadd.s32 4294967295, %s921_s21   ;;  %s636_s23 = sadd.s32 4294967294, %s921_s21   ;;  %s921_s21 = sphi %s965_s21, %s1176_s21   ;;  %s917_s20 = sphi %s963_s20, %s1175_s20   ;;  %s913_s19 = sphi %s961_s19, %s1174_s19   ;;  %s909_s18 = sphi %s959_s18, %s1173_s18  }
   0x7   : > { %s984_s24 = sadd.s32 1, %s921_s21   ;;  %s119_s25 = sadd.s32 1, %s917_s20 }
   0x8   : > { %s116_s26 = ssub.s32 %s921_s21, %s984_s24  ;;  %p129_p0 = scmp.ne.s32.totalorder %s917_s20, %s913_s19 }
   0x9   : > { %p117_p1 = scmp.eq.s32.totalorder %s116_s26, 0  ;;  %p130_p2 = scmp.eq.s32.totalorder %s980_s22, 7 }
   0xa   : > { %p135_p3 = scmp.ne.s32.totalorder %s913_s19, %s909_s18  ;;  %p136_p4 = scmp.eq.s32.totalorder %s636_s23, 7 }
   0xb   : > { %s995_s27 = scalar_select %p117_p1, %s917_s20, %s119_s25  }
   0xc   : > { %p997_p5 = por %p130_p2, %p129_p0  ;;  %p1001_p6 = por %p136_p4, %p135_p3 }
   0xd   : > { %p637_p7 = scmp.ge.s32.totalorder %s921_s21, 1  ;;  %p169_p8 = scmp.lt.s32.totalorder %s921_s21, 9 }
   0xe   : > { %s1163_s28 = scalar_select %p997_p5, 1, 0 }
   0xf   : > { %s1164_s29 = scalar_select %p1001_p6, 1, 0 }
  0x10   : > { %p1160_p10 = scmp.eq.s32.totalorder %s980_s22, 0  ;;  %p1009_p11 = pnand %p637_p7, %p169_p8 }
  0x11   : > { %s923_s6 = smov [#allocation4]   ;;  %s795_s11 = scalar_lea.hbm %s1155_s1, 8192 }
  0x12   : > { %s1165_s30 = scalar_select %p1009_p11, 1, 0 }
  0x13   : > { %s181_s7 = sshll.u32 %s923_s6, 4  ;;  %p729_p12 = pneg %p1009_p11  ;;  %s182_s7 = int_to_ptr.vmem [resolvable:$true] %s181_s7 }
  0x14   : > { %p796_p0 = scmp.ne.s32.totalorder %s1155_s1, %s795_s11  ;;  %p802_p4 = scmp.lt.u32.totalorder %s795_s11, %s1155_s1 }
  0x15   : > { %p1017_p13 = pnand %p1160_p10, %p729_p12 }
  0x17   : > { %p797_p1 = pneg %p1017_p13 }
  0x19   : > { %p798_p2 = pnand %p797_p1, %p796_p0 }
  0x1b   : > { %p799_p3 = pneg %p798_p2 }
  0x1d   : > { %p804_p7 = pnand %p802_p4, %p799_p3 }
  0x1f   : > { %807 = shalt.err (!%p804_p7)
}
  0x20   : > { %s808_s16 = scalar_lea.vmem %s182_s7, 8192  ;;  %p816_p10 = scmp.lt.s32.totalorder %s182_s7, %s182_s7 }
  0x21   : > { %p809_p8 = scmp.ne.s32.totalorder %s182_s7, %s808_s16  ;;  %p817_p6 = scmp.lt.s32.totalorder %s808_s16, %s808_s16 }
  0x23   : > { %p811_p12 = pnand %p809_p8, %p797_p1  ;;  %p818_p5 = por %p817_p6, %p816_p10 }
  0x25   : > { %p812_p9 = pneg %p811_p12 }
  0x27   : > { %p819_p11 = pnand %p818_p5, %p812_p9 }
  0x29   : > { %822 = shalt.err (!%p819_p11)
}
  0x2a   : > { %s924_s17 = smov 512   ;;  %s925_s23 = smov 32  }
  0x2b   : > { %732 = dma.hbm_to_vmem [thread:$0]  (!%p1017_p13), %s1155_s1, 8192, %s182_s7, [#allocation5], %s924_s17, %s924_s17, %s925_s23  }
  0x2c   : > { %p1167_p0 = scmp.ne.s32.totalorder %s1165_s30, 0 }
  0x2d   : > { %p1168_p2 = scmp.eq.s32.totalorder (!%p1167_p0), %s980_s22, 0 }
  0x2e   : > { %211 = sbr.rel (%p1167_p0) target bundleno = 384 (0x180), region = 36 }
  0x35   : > { %896 = dma.done.wait (%p1168_p2), [#allocation5], 8192   ;;  %p1169_p1 = pmov %p1168_p2 }
  0x36   : > { %s1044_s6 = sand.u32 1, %s913_s19   ;;  %p244_p5 = scmp.lt.s32.totalorder %s980_s22, 7 }
  0x37   : > { %898 = vsyncadd (%p1169_p1), [#allocation5], 4294959104  ;;  %s642_s8 = sshll.u32 %s1044_s6, 3  ;;  %p1170_p6 = scmp.ne.s32.totalorder %s980_s22, 0 }
  0x38   : > { %s245_s9 = scalar_select %p244_p5, %s980_s22, 7 }
  0x39   : > { %s1054_s12 = scalar_lea.vmem [#allocation7], %s642_s8  ;;  %s1056_s13 = scalar_lea.vmem [#allocation8], %s642_s8  ;;  %v253_v0 = vld [vmem:[%s1156_s2] sm:$0xff] (!%p1170_p6) }
  0x3a   : > { %s656_s10 = sshll.u32 %s245_s9, 5  ;;  %252 = sbr.rel (%p1170_p6) target bundleno = 65 (0x41), region = 44  ;;  %v255_v1 = vld [vmem:[%s1157_s3] sm:$0xff] (!%p1170_p6)  ;;  %254 = vst [vmem:[#allocation2] sm:$0xff] (!%p1170_p6), %v253_v0 }
  0x3b   : > { %s1052_s30 = scalar_lea.vmem %s1154_s0, %s656_s10  ;;  %256 = vst [vmem:[#allocation3] sm:$0xff] (!%p1170_p6), %v255_v1 }
  0x41 PF: > { %v263_v2 = vld [vmem:[#allocation4 + $0x8] sm:$0xff]  ;;  %v262_v4 = vld [vmem:[#allocation4] sm:$0xff]  ;;  %v926_v9 = vmov 0.0   ;;  %v265_v21 = vld [vmem:[#allocation4 + $0x18] sm:$0xff]  ;;  %s652_s23 = sshll.u32 %s980_s22, 7  ;;  %s533_s25 = sshll.u32 %s1056_s13, 4  ;;  %s1079_s25 = int_to_ptr.vmem [resolvable:$true] %s533_s25 }
  0x42   : > { %v267_v3 = vld [vmem:[#allocation4 + $0x28] sm:$0xff]  ;;  %v266_v6 = vld [vmem:[#allocation4 + $0x20] sm:$0xff]  ;;  %390 = vmatprep.mubr.f32.mxu0 %v926_v9  ;;  %461 = vmatprep.mubr.f32.mxu1 %v926_v9  ;;  %v269_v22 = vld [vmem:[#allocation4 + $0x38] sm:$0xff]  ;;  %s1077_s9 = scalar_lea.hbm %s1159_s5, %s652_s23  ;;  %s507_s10 = scalar_lea.sflag [#allocation9], %s1044_s6 }
  0x43   : > { %v657_v5 = vpack.c.bf16 %v267_v3, %v263_v2  ;;  %v271_v7 = vld [vmem:[#allocation4 + $0x48] sm:$0xff]  ;;  %v659_v10 = vpack.c.bf16 %v266_v6, %v262_v4  ;;  %v270_v12 = vld [vmem:[#allocation4 + $0x40] sm:$0xff]  ;;  %v689_v24 = vpack.c.bf16 %v269_v22, %v265_v21  ;;  %v264_v25 = vld [vmem:[#allocation4 + $0x10] sm:$0xff]  ;;  %s823_s7 = scalar_lea.vmem %s1079_s25, 128  ;;  %p1171_p10 = scmp.ne.s32.totalorder %s1163_s28, 0 }
  0x44   : > { %v275_v8 = vld [vmem:[#allocation4 + $0x68] sm:$0xff]  ;;  %v274_v13 = vld [vmem:[#allocation4 + $0x60] sm:$0xff]  ;;  %v268_v26 = vld [vmem:[#allocation4 + $0x30] sm:$0xff]  ;;  %p824_p9 = scmp.ne.s32.totalorder %s1079_s25, %s823_s7  ;;  %s927_s11 = smov [#allocation8]  }
  0x45   : > { %v661_v11 = vpack.c.bf16 %v275_v8, %v271_v7  ;;  %v279_v14 = vld [vmem:[#allocation4 + $0x88] sm:$0xff]  ;;  %658 = vmatprep.subr.bf16.mxu0 %v657_v5  ;;  %v663_v16 = vpack.c.bf16 %v274_v13, %v270_v12  ;;  %v278_v17 = vld [vmem:[#allocation4 + $0x80] sm:$0xff]  ;;  %v691_v27 = vpack.c.bf16 %v268_v26, %v264_v25  ;;  %690 = vmatprep.subr.bf16.mxu1 %v689_v24  ;;  %v273_v29 = vld [vmem:[#allocation4 + $0x58] sm:$0xff] }
  0x46   : > { %v283_v15 = vld [vmem:[#allocation4 + $0xa8] sm:$0xff]  ;;  %660 = vmatpush1.bf16.msra.mxu0 %v659_v10  ;;  %v282_v18 = vld [vmem:[#allocation4 + $0xa0] sm:$0xff]  ;;  %v277_v30 = vld [vmem:[#allocation4 + $0x78] sm:$0xff]  ;;  %p825_p11 = pnand %p824_p9, %p1171_p10 }
  0x47   : > { %662 = vmatprep.subr.bf16.mxu0 %v661_v11  ;;  %v665_v19 = vpack.c.bf16 %v283_v15, %v279_v14  ;;  %v287_v20 = vld [vmem:[#allocation4 + $0xc8] sm:$0xff]  ;;  %v667_v28 = vpack.c.bf16 %v282_v18, %v278_v17  ;;  %v272_v31 = vld [vmem:[#allocation4 + $0x50] sm:$0xff]  ;;  %v286_v33 = vld [vmem:[#allocation4 + $0xc0] sm:$0xff]  ;;  %692 = vmatpush1.bf16.msra.mxu1 %v691_v27  ;;  %v693_v35 = vpack.c.bf16 %v277_v30, %v273_v29 }
  0x48   : > { %v291_v23 = vld [vmem:[#allocation4 + $0xe8] sm:$0xff]  ;;  %v290_v34 = vld [vmem:[#allocation4 + $0xe0] sm:$0xff]  ;;  %v276_v36 = vld [vmem:[#allocation4 + $0x70] sm:$0xff]  ;;  %p826_p13 = pneg %p825_p11 }
  0x49   : > { %v669_v32 = vpack.c.bf16 %v291_v23, %v287_v20  ;;  %v295_v37 = vld [vmem:[#allocation4 + $0x108] sm:$0xff]  ;;  %v695_v39 = vpack.c.bf16 %v276_v36, %v272_v31  ;;  %v281_v40 = vld [vmem:[#allocation4 + $0x98] sm:$0xff]  ;;  %694 = vmatprep.subr.bf16.mxu1 %v693_v35  ;;  %v280_v42 = vld [vmem:[#allocation4 + $0x90] sm:$0xff]  ;;  %v671_v44 = vpack.c.bf16 %v290_v34, %v286_v33 }
  0x4a   : > { %664 = vmatpush1.bf16.msra.mxu0 %v663_v16  ;;  %v299_v38 = vld [vmem:[#allocation4 + $0x128] sm:$0xff]  ;;  %v285_v41 = vld [vmem:[#allocation4 + $0xb8] sm:$0xff]  ;;  %v284_v43 = vld [vmem:[#allocation4 + $0xb0] sm:$0xff] }
  0x4b   : > { %666 = vmatprep.subr.bf16.mxu0 %v665_v19  ;;  %v294_v45 = vld [vmem:[#allocation4 + $0x100] sm:$0xff]  ;;  %v697_v47 = vpack.c.bf16 %v285_v41, %v281_v40  ;;  %v673_v48 = vpack.c.bf16 %v299_v38, %v295_v37  ;;  %696 = vmatpush1.bf16.msra.mxu1 %v695_v39  ;;  %v303_v49 = vld [vmem:[#allocation4 + $0x148] sm:$0xff]  ;;  %v699_v50 = vpack.c.bf16 %v284_v43, %v280_v42  ;;  %v289_v51 = vld [vmem:[#allocation4 + $0xd8] sm:$0xff] }
  0x4c   : > { %v298_v46 = vld [vmem:[#allocation4 + $0x120] sm:$0xff]  ;;  %v293_v52 = vld [vmem:[#allocation4 + $0xf8] sm:$0xff]  ;;  %v307_v53 = vld [vmem:[#allocation4 + $0x168] sm:$0xff] }
  0x4d   : > { %698 = vmatprep.subr.bf16.mxu1 %v697_v47  ;;  %v701_v54 = vpack.c.bf16 %v293_v52, %v289_v51  ;;  %v288_v55 = vld [vmem:[#allocation4 + $0xd0] sm:$0xff]  ;;  %v675_v57 = vpack.c.bf16 %v298_v46, %v294_v45  ;;  %v297_v58 = vld [vmem:[#allocation4 + $0x118] sm:$0xff]  ;;  %v677_v60 = vpack.c.bf16 %v307_v53, %v303_v49  ;;  %v302_v61 = vld [vmem:[#allocation4 + $0x140] sm:$0xff] }
  0x4e   : > { %668 = vmatpush1.bf16.msra.mxu0 %v667_v28  ;;  %v292_v56 = vld [vmem:[#allocation4 + $0xf0] sm:$0xff]  ;;  %v301_v59 = vld [vmem:[#allocation4 + $0x138] sm:$0xff]  ;;  %v306_v62 = vld [vmem:[#allocation4 + $0x160] sm:$0xff] }
  0x4f   : > { %670 = vmatprep.subr.bf16.mxu0 %v669_v32  ;;  %700 = vmatpush1.bf16.msra.mxu1 %v699_v50  ;;  %v311_v63 = vld [vmem:[#allocation4 + $0x188] sm:$0xff]  ;;  %v703_v0 = vpack.c.bf16 %v292_v56, %v288_v55  ;;  %v705_v2 = vpack.c.bf16 %v301_v59, %v297_v58  ;;  %v296_v3 = vld [vmem:[#allocation4 + $0x110] sm:$0xff]  ;;  %v305_v5 = vld [vmem:[#allocation4 + $0x158] sm:$0xff]  ;;  %v679_v7 = vpack.c.bf16 %v306_v62, %v302_v61 }
  0x50   : > { %v315_v1 = vld [vmem:[#allocation4 + $0x1a8] sm:$0xff]  ;;  %702 = vmatprep.subr.bf16.mxu1 %v701_v54  ;;  %v300_v4 = vld [vmem:[#allocation4 + $0x130] sm:$0xff]  ;;  %v309_v6 = vld [vmem:[#allocation4 + $0x178] sm:$0xff] }
  0x51   : > { %v681_v8 = vpack.c.bf16 %v315_v1, %v311_v63  ;;  %v310_v9 = vld [vmem:[#allocation4 + $0x180] sm:$0xff]  ;;  %v319_v11 = vld [vmem:[#allocation4 + $0x1c8] sm:$0xff]  ;;  %v707_v12 = vpack.c.bf16 %v300_v4, %v296_v3  ;;  %v709_v14 = vpack.c.bf16 %v309_v6, %v305_v5  ;;  %v304_v15 = vld [vmem:[#allocation4 + $0x150] sm:$0xff] }
  0x52   : > { %672 = vmatpush1.bf16.msra.mxu0 %v671_v44  ;;  %v314_v10 = vld [vmem:[#allocation4 + $0x1a0] sm:$0xff]  ;;  %v323_v13 = vld [vmem:[#allocation4 + $0x1e8] sm:$0xff]  ;;  %v308_v16 = vld [vmem:[#allocation4 + $0x170] sm:$0xff] }
  0x53   : > { %674 = vmatprep.subr.bf16.mxu0 %v673_v48  ;;  %704 = vmatpush1.bf16.msra.mxu1 %v703_v0  ;;  %v313_v17 = vld [vmem:[#allocation4 + $0x198] sm:$0xff]  ;;  %v683_v19 = vpack.c.bf16 %v314_v10, %v310_v9  ;;  %v685_v20 = vpack.c.bf16 %v323_v13, %v319_v11  ;;  %v318_v21 = vld [vmem:[#allocation4 + $0x1c0] sm:$0xff]  ;;  %v711_v23 = vpack.c.bf16 %v308_v16, %v304_v15  ;;  %v312_v25 = vld [vmem:[#allocation4 + $0x190] sm:$0xff] }
  0x54   : > { %706 = vmatprep.subr.bf16.mxu1 %v705_v2  ;;  %v317_v18 = vld [vmem:[#allocation4 + $0x1b8] sm:$0xff]  ;;  %v322_v22 = vld [vmem:[#allocation4 + $0x1e0] sm:$0xff]  ;;  %v316_v26 = vld [vmem:[#allocation4 + $0x1b0] sm:$0xff] }
  0x55   : > { %v713_v24 = vpack.c.bf16 %v317_v18, %v313_v17  ;;  %v321_v27 = vld [vmem:[#allocation4 + $0x1d8] sm:$0xff]  ;;  %v687_v29 = vpack.c.bf16 %v322_v22, %v318_v21  ;;  %v715_v30 = vpack.c.bf16 %v316_v26, %v312_v25  ;;  %v320_v32 = vld [vmem:[#allocation4 + $0x1d0] sm:$0xff]  ;;  %v260_v44 = vld [vmem:[%s1052_s30 + $0x18] sm:$0xff] }
  0x56   : > { %676 = vmatpush1.bf16.msra.mxu0 %v675_v57  ;;  %v325_v28 = vld [vmem:[#allocation4 + $0x1f8] sm:$0xff]  ;;  %v324_v33 = vld [vmem:[#allocation4 + $0x1f0] sm:$0xff]  ;;  %v259_v48 = vld [vmem:[%s1052_s30 + $0x10] sm:$0xff] }
  0x57   : > { %678 = vmatprep.subr.bf16.mxu0 %v677_v60  ;;  %708 = vmatpush1.bf16.msra.mxu1 %v707_v12  ;;  %v717_v31 = vpack.c.bf16 %v325_v28, %v321_v27  ;;  %v261_v34 = vld [vmem:[#allocation2] sm:$0xff]  ;;  %v719_v35 = vpack.c.bf16 %v324_v33, %v320_v32  ;;  %v258_v37 = vld [vmem:[%s1052_s30 + $0x8] sm:$0xff] }
  0x58   : > { %710 = vmatprep.subr.bf16.mxu1 %v709_v14  ;;  %v257_v36 = vld [vmem:[%s1052_s30] sm:$0xff]  ;;  %v491_v57 = vld [vmem:[#allocation3] sm:$0xff]  ;;  %s827_s30 = sshll.u32 %s927_s11, 4  ;;  %s828_s30 = int_to_ptr.vmem [resolvable:$false] %s827_s30 }
  0x59   : > { %s829_s14 = scalar_lea.vmem %s828_s30, 256  ;;  %p830_p3 = scmp.lt.s32.totalorder %s1079_s25, %s828_s30 }
  0x5a   : > { %680 = vmatpush1.bf16.msra.mxu0 %v679_v7  ;;  %p831_p4 = scmp.lt.s32.totalorder %s829_s14, %s823_s7 }
  0x5b   : > { %682 = vmatprep.subr.bf16.mxu0 %v681_v8  ;;  %712 = vmatpush1.bf16.msra.mxu1 %v711_v23 }
  0x5c   : > { %714 = vmatprep.subr.bf16.mxu1 %v713_v24  ;;  %p832_p7 = por %p831_p4, %p830_p3 }
  0x5e   : > { %684 = vmatpush1.bf16.msra.mxu0 %v683_v19  ;;  %p833_p8 = pnand %p832_p7, %p826_p13 }
  0x5f   : > { %686 = vmatprep.subr.bf16.mxu0 %v685_v20  ;;  %716 = vmatpush1.bf16.msra.mxu1 %v715_v30 }
  0x60   : > { %718 = vmatprep.subr.bf16.mxu1 %v717_v31 }
  0x62   : > { %688 = vmatpush1.bf16.msra.mxu0 %v687_v29 }
  0x63   : > { %720 = vmatpush1.bf16.msra.mxu1 %v719_v35 }
  0x65   : > { %391 = vmatmul.mubr.f32.vlgmr.msra.gmra.mrb[0].mxu0 %v261_v34 }
  0x66   : > { %462 = vmatmul.mubr.f32.vlgmr.msra.gmra.mrb[0].mxu1 %v261_v34 }
 0x138   : > { %v392_v38 = vpop.f32.mrb[0].mxu0 }
 0x139   : > { %v468_v39 = vadd.f32 %v392_v38, %v257_v36  ;;  %v394_v40 = vpop.f32.mrb[1].mxu0  ;;  %v463_v45 = vpop.f32.mrb[0].mxu1 }
 0x13a   : > { %v469_v41 = vadd.f32 %v394_v40, %v258_v37  ;;  %v465_v46 = vpop.f32.mrb[1].mxu1  ;;  %v470_v50 = vadd.f32 %v463_v45, %v259_v48 }
 0x13b   : > { %v647_v42 = vmul.f32 -1.442695, %v468_v39  ;;  %v471_v47 = vadd.f32 %v465_v46, %v260_v44 }
 0x13c   : > { %v648_v43 = vmul.f32 -1.442695, %v469_v41 }
 0x13d   : > { %779 = vpow2.f32 %v647_v42  ;;  %v649_v49 = vmul.f32 -1.442695, %v471_v47 }
 0x13e   : > { %781 = vpow2.f32 %v648_v43 }
 0x13f   : > { %783 = vpow2.f32 %v649_v49 }
 0x140   : > { %785 = vtanh.f32 %v470_v50 }
 0x147   : > { %v780_v51 = vpop.eup %779 }
 0x148   : > { %v782_v52 = vpop.eup %781  ;;  %v475_v53 = vadd.f32 1.0, %v780_v51 }
 0x149   : > { %v481_v54 = vadd.f32 1.0, %v782_v52  ;;  %v784_v55 = vpop.eup %783 }
 0x14a   : > { %787 = vrcp.f32 %v475_v53  ;;  %v786_v56 = vpop.eup %785  ;;  %v488_v59 = vadd.f32 1.0, %v784_v55 }
 0x14b   : > { %789 = vrcp.f32 %v481_v54 }
 0x14c   : > { %791 = vrcp.f32 %v488_v59 }
 0x154   : > { %v788_v58 = vpop.eup %787 }
 0x155   : > { %v790_v60 = vpop.eup %789  ;;  %v493_v61 = vmul.f32 %v788_v58, %v786_v56 }
 0x156   : > { %v492_v62 = vmul.f32 %v790_v60, %v491_v57 }
 0x158   : > { %v494_v63 = vadd.f32 %v493_v61, %v492_v62 }
 0x15a   : > { %498 = vst [vmem:[#allocation3] sm:$0xff] %v494_v63  ;;  %500 = vst [vmem:[%s1056_s13] sm:$0xff] %v494_v63  ;;  %793 = vtanh.f32 %v494_v63 }
 0x15b   : > { %836 = shalt.err (!%p833_p8)
}
 0x15c   : > { %s837_s13 = scalar_lea.hbm %s1077_s9, 128  ;;  %s841_s17 = scalar_lea.hbm %s1159_s5, 1024 }
 0x15d   : > { %p838_p12 = scmp.ne.s32.totalorder %s1077_s9, %s837_s13  ;;  %p842_p1 = scmp.lt.u32.totalorder %s1077_s9, %s1159_s5 }
 0x15e   : > { %p843_p5 = scmp.lt.u32.totalorder %s841_s17, %s837_s13  ;;  %p845_p9 = scmp.lt.u32.totalorder %s837_s13, %s1077_s9 }
 0x15f   : > { %p839_p0 = pnand %p838_p12, %p1171_p10 }
 0x160   : > { %p844_p6 = por %p843_p5, %p842_p1 }
 0x161   : > { %p840_p2 = pneg %p839_p0 }
 0x162   : > { %p846_p11 = por %p845_p9, %p844_p6 }
 0x164   : > { %p847_p13 = pnand %p846_p11, %p840_p2 }
 0x166   : > { %850 = shalt.err (!%p847_p13)
}
 0x167   : > { %726 = dma.vmem_to_hbm [thread:$0]  (%p1171_p10), %s1079_s25, 128, %s1077_s9, %s507_s10   ;;  %v792_v0 = vpop.eup %791 }
 0x168   : > { %s520_s7 = sshll.u32 %s1054_s12, 4  ;;  %v794_v1 = vpop.eup %793  ;;  %s1110_s14 = scalar_lea.hbm %s1158_s4, %s652_s23  ;;  %s1112_s7 = int_to_ptr.vmem [resolvable:$true] %s520_s7 }
 0x169   : > { %v496_v2 = vmul.f32 %v794_v1, %v792_v0  ;;  %s502_s13 = scalar_lea.sflag [#allocation6], %s1044_s6  ;;  %s851_s15 = scalar_lea.vmem %s1112_s7, 128 }
 0x16a   : > { %p852_p3 = scmp.ne.s32.totalorder %s1112_s7, %s851_s15  ;;  %s928_s25 = smov [#allocation7]  }
 0x16b   : > { %497 = vst [vmem:[#allocation2] sm:$0xff] %v496_v2  ;;  %499 = vst [vmem:[%s1054_s12] sm:$0xff] %v496_v2  ;;  %s855_s22 = sshll.u32 %s928_s25, 4  ;;  %s856_s22 = int_to_ptr.vmem [resolvable:$false] %s855_s22 }
 0x16c   : > { %p853_p4 = pnand %p852_p3, %p1171_p10  ;;  %s857_s9 = scalar_lea.vmem %s856_s22, 256 }
 0x16d   : > { %p858_p8 = scmp.lt.s32.totalorder %s1112_s7, %s856_s22  ;;  %p859_p12 = scmp.lt.s32.totalorder %s857_s9, %s851_s15 }
 0x16e   : > { %p854_p7 = pneg %p853_p4 }
 0x16f   : > { %p860_p0 = por %p859_p12, %p858_p8 }
 0x171   : > { %p861_p2 = pnand %p860_p0, %p854_p7 }
 0x173   : > { %864 = shalt.err (!%p861_p2)
}
 0x174   : > { %s865_s6 = scalar_lea.hbm %s1110_s14, 128  ;;  %s869_s10 = scalar_lea.hbm %s1158_s4, 1024 }
 0x175   : > { %p866_p1 = scmp.ne.s32.totalorder %s1110_s14, %s865_s6  ;;  %p870_p9 = scmp.lt.u32.totalorder %s1110_s14, %s1158_s4 }
 0x176   : > { %p871_p11 = scmp.lt.u32.totalorder %s869_s10, %s865_s6  ;;  %p873_p3 = scmp.lt.u32.totalorder %s865_s6, %s1110_s14 }
 0x177   : > { %p867_p5 = pnand %p866_p1, %p1171_p10 }
 0x178   : > { %p872_p13 = por %p871_p11, %p870_p9 }
 0x179   : > { %p868_p6 = pneg %p867_p5 }
 0x17a   : > { %p874_p4 = por %p873_p3, %p872_p13 }
 0x17c   : > { %p875_p7 = pnand %p874_p4, %p868_p6 }
 0x17e   : > { %878 = shalt.err (!%p875_p7)
}
 0x17f   : > { %725 = dma.vmem_to_hbm [thread:$0]  (%p1171_p10), %s1112_s7, 128, %s1110_s14, %s502_s13  }
 0x180 PF: > { %p742_p8 = scmp.ge.s32.totalorder %s921_s21, 2  ;;  %s545_s26 = sand.u32 1, %s909_s18  }
 0x181   : > { %p1172_p12 = scmp.ne.s32.totalorder %s1164_s29, 0  ;;  %s546_s8 = scalar_lea.sflag [#allocation6], %s545_s26 }
 0x183   : > { %p734_p0 = pnand %p742_p8, %p1172_p12 }
 0x185   : > { %900 = dma.done.wait (!%p734_p0), %s546_s8, 128  }
 0x186   : > { %902 = vsyncadd (!%p734_p0), %s546_s8, 4294967168  ;;  %s555_s11 = scalar_lea.sflag [#allocation9], %s545_s26 }
 0x187   : > { %904 = dma.done.wait (!%p734_p0), %s555_s11, 128  }
 0x188   : > { %906 = vsyncadd (!%p734_p0), %s555_s11, 4294967168  ;;  %p20_p10 = scmp.ge.s32.totalorder %s984_s24, 10   ;;  %s1173_s18 = smov %s913_s19 }
 0x189   : > { %s1174_s19 = smov %s917_s20  ;;  %s1175_s20 = smov %s995_s27 }
 0x18a   : > { %s1176_s21 = smov %s984_s24  ;;  %22 = sbr.rel (!%p20_p10) target bundleno = 6 (0x6), region = 97 }
 0x191   :  { %560 = vsyncpa [#allocation5], 1 }
 0x192   :  { %562 = vsyncpa [#allocation5 + $0x1], 1 }
 0x193   :  { %563 = vsyncpa [#allocation6], 1 }
 0x194   :  { %565 = vsyncpa [#allocation6 + $0x1], 1 }
 0x195   :  { %566 = vsyncpa [#allocation9], 1 }
 0x196   :  { %568 = vsyncpa [#allocation9 + $0x1], 1 }

</bundles_post_ra>
